<compile_context>
chip_gen: v7x
topology: tpu7x:2x2x1
jax: 0.10.0
libtpu: 0.0.40
codegen_flags: <defaults>
</compile_context>

<pallas_src>
import jax
import jax.numpy as jnp
from jax.experimental import pallas as pl
from jax.experimental.pallas import tpu as pltpu


def _critics_kernel(x_ref, w1_ref, b1_ref, w2_ref, b2_ref, w3_ref, b3_ref, q_ref):
    # x_ref:  (D_in, TB)        batch tile of concat([features, actions]).T
    # w1_ref: (C*H, D_in)       stacked layer-1 weights (PyTorch (out,in) layout)
    # b1_ref: (C*H, 1)
    # w2_ref: (C*H, C*H)        block-diagonal stacked layer-2 weights
    # b2_ref: (C*H, 1)
    # w3_ref: (C, C*H)          row c holds critic c's Linear(H,1) weights in its band
    # b3_ref: (C, 1)
    # q_ref:  (C, TB)           lane-dense output block
    x = x_ref[...]
    h1 = jnp.dot(w1_ref[...], x, preferred_element_type=jnp.float32)
    h1 = jnp.maximum(h1 + b1_ref[...], 0.0)                       # ReLU, (C*H, TB)
    h2 = jnp.dot(w2_ref[...], h1, preferred_element_type=jnp.float32)
    h2 = jnp.maximum(h2 + b2_ref[...], 0.0)                       # ReLU, (C*H, TB)
    q = jnp.dot(w3_ref[...], h2, preferred_element_type=jnp.float32)
    q_ref[...] = q + b3_ref[...]                                  # (C, TB), full-block store


def _pick_batch_tile(B: int, min_tiles: int = 1) -> int:
    """Pick a batch (lane) tile.

    Only tiles that keep every block legal under the (8,128) rule are allowed:
    either the whole batch (block dim == full array dim) or tb % 128 == 0.
    Default policy is the fewest possible tiles (v5e/v6e run the grid serially,
    each step costs ~0.35 us).  Pass min_tiles=2 on v7x so the 'parallel' batch
    axis can actually shard across its 2 TensorCores.
    """
    if B % 128 != 0 or (min_tiles <= 1 and B <= 1024):
        return B
    for tb in (512, 256, 128):
        if B % tb == 0 and B // tb >= min_tiles:
            return tb
    return B


def _pack_params(params):
    """Pack per-critic PyTorch-layout weights into the fused kernel layout."""
    w1, b1 = params["w1"], params["b1"]        # (C, H, D_in), (C, H)
    w2, b2 = params["w2"], params["b2"]        # (C, H, H),    (C, H)
    w3, b3 = params["w3"], params["b3"]        # (C, 1, H),    (C, 1)
    C, H, d_in = w1.shape
    ch = C * H
    w1s = w1.reshape(ch, d_in).astype(jnp.float32)
    b1s = b1.reshape(ch, 1).astype(jnp.float32)
    # Block-diagonal layer-2: off-diagonal blocks are exact zeros, so the fused
    # matmul is numerically equivalent to the per-critic matmuls.
    w2bd = jax.scipy.linalg.block_diag(*[w2[c] for c in range(C)]).astype(jnp.float32)
    b2s = b2.reshape(ch, 1).astype(jnp.float32)
    # Layer-3 packed as (C, C*H): row c holds critic c's weights in its own band.
    w3s = jax.scipy.linalg.block_diag(*[w3[c] for c in range(C)]).astype(jnp.float32)
    b3s = b3.reshape(C, 1).astype(jnp.float32)
    return w1s, b1s, w2bd, b2s, w3s, b3s


def continuous_critic_forward(obs, actions, params, *, min_batch_tiles: int = 1):
    """
    obs:     (B, *obs_shape) float32
    actions: (B, action_dim) float32
    params:  dict of per-critic weights in PyTorch nn.Linear layout:
             w1 (C, H, D_in), b1 (C, H), w2 (C, H, H), b2 (C, H), w3 (C, 1, H), b3 (C, 1)
    Returns a tuple of n_critics arrays of shape (B, 1) (matching the torch module).
    """
    B = obs.shape[0]
    features = obs.reshape(B, -1).astype(jnp.float32)          # FlattenExtractor
    actions = actions.astype(jnp.float32)
    # qvalue_input = concat([features, actions], dim=1); keep the batch in LANES.
    x_t = jnp.concatenate([features, actions], axis=1).T       # (D_in, B)

    w1s, b1s, w2bd, b2s, w3s, b3s = _pack_params(params)
    ch, d_in = w1s.shape
    n_critics = w3s.shape[0]

    tb = _pick_batch_tile(B, min_batch_tiles)
    n_tiles = B // tb

    out = pl.pallas_call(
        _critics_kernel,
        out_shape=jax.ShapeDtypeStruct((n_critics, B), jnp.float32),
        grid_spec=pltpu.PrefetchScalarGridSpec(
            num_scalar_prefetch=0,
            grid=(n_tiles,),
            in_specs=[
                # batch-tiled activations (batch in lanes)
                pl.BlockSpec((d_in, tb), lambda i: (0, i)),
                # weights: constant block index across batch tiles -> VMEM-resident
                pl.BlockSpec((ch, d_in), lambda i: (0, 0)),
                pl.BlockSpec((ch, 1), lambda i: (0, 0)),
                pl.BlockSpec((ch, ch), lambda i: (0, 0)),
                pl.BlockSpec((ch, 1), lambda i: (0, 0)),
                pl.BlockSpec((n_critics, ch), lambda i: (0, 0)),
                pl.BlockSpec((n_critics, 1), lambda i: (0, 0)),
            ],
            out_specs=pl.BlockSpec((n_critics, tb), lambda i: (0, i)),
        ),
        compiler_params=pltpu.CompilerParams(
            # batch tiles are independent -> shardable across v7x's 2 TensorCores
            dimension_semantics=("parallel",),
        ),
    )(x_t, w1s, b1s, w2bd, b2s, w3s, b3s)

    # (n_critics, B) -> tuple of (B, 1), matching the PyTorch module's output.
    return tuple(out[i][:, None] for i in range(n_critics))


def init_params(key, n_critics, obs_dim, action_dim, hidden):
    """Deterministic synthetic init (uniform, roughly matching nn.Linear scale),
    stored per-critic in PyTorch (out_features, in_features) layout."""
    keys = jax.random.split(key, 6)
    d_in = obs_dim + action_dim

    def unif(k, shape, fan_in):
        bound = 1.0 / jnp.sqrt(fan_in)
        return jax.random.uniform(k, shape, jnp.float32, -bound, bound)

    return {
        "w1": unif(keys[0], (n_critics, hidden, d_in), d_in),
        "b1": unif(keys[1], (n_critics, hidden), d_in),
        "w2": unif(keys[2], (n_critics, hidden, hidden), hidden),
        "b2": unif(keys[3], (n_critics, hidden), hidden),
        "w3": unif(keys[4], (n_critics, 1, hidden), hidden),
        "b3": unif(keys[5], (n_critics, 1), hidden),
    }


def _reference_forward(obs, actions, params):
    """Pure-JAX reference of the same forward pass (for a sanity check)."""
    B = obs.shape[0]
    f = obs.reshape(B, -1)
    x = jnp.concatenate([f, actions], axis=1)
    outs = []
    for c in range(params["w1"].shape[0]):
        h1 = jnp.maximum(x @ params["w1"][c].T + params["b1"][c], 0.0)
        h2 = jnp.maximum(h1 @ params["w2"][c].T + params["b2"][c], 0.0)
        q = h2 @ params["w3"][c].T + params["b3"][c]
        outs.append(q)
    return tuple(outs)


if __name__ == "__main__":
    key = jax.random.PRNGKey(0)
    k_obs, k_act, k_par = jax.random.split(key, 3)

    batch = 2
    obs_dim = 16       # FlattenExtractor -> features_dim = 16
    action_dim = 4
    hidden = 32        # net_arch = [32, 32]
    n_critics = 2

    obs = jax.random.normal(k_obs, (batch, obs_dim), jnp.float32)
    actions = jax.random.normal(k_act, (batch, action_dim), jnp.float32)
    params = init_params(k_par, n_critics, obs_dim, action_dim, hidden)

    q_vals = continuous_critic_forward(obs, actions, params)
    q_vals = jax.block_until_ready(q_vals)

    # Correctness check against pure-JAX reference.
    q_ref = _reference_forward(obs, actions, params)
    for a, b in zip(q_vals, q_ref):
        assert a.shape == (batch, 1)
        assert jnp.allclose(a, b, atol=1e-5, rtol=1e-5)

    print("KERNEL_OK")
</pallas_src>

<mosaic_0001>
module attributes {stable_mosaic.version = 11 : i64} {
  func.func @_critics_kernel(%arg0: i32, %arg1: memref<20x2xf32, #tpu.memory_space<vmem>>, %arg2: memref<64x20xf32, #tpu.memory_space<vmem>>, %arg3: memref<64x1xf32, #tpu.memory_space<vmem>>, %arg4: memref<64x64xf32, #tpu.memory_space<vmem>>, %arg5: memref<64x1xf32, #tpu.memory_space<vmem>>, %arg6: memref<2x64xf32, #tpu.memory_space<vmem>>, %arg7: memref<2x1xf32, #tpu.memory_space<vmem>>, %arg8: memref<2x2xf32, #tpu.memory_space<vmem>>) attributes {dimension_semantics = [#tpu.dimension_semantics<parallel>], iteration_bounds = array<i64: 1>, scalar_prefetch = 0 : i64, scratch_operands = 0 : i64, tpu.core_type = #tpu.core_type<tc>, window_params = [{transform_indices = @transform_0, window_bounds = array<i64: 20, 2>}, {pipeline_mode = #tpu.pipeline_mode<synchronous>, transform_indices = @transform_1, window_bounds = array<i64: 64, 20>}, {pipeline_mode = #tpu.pipeline_mode<synchronous>, transform_indices = @transform_2, window_bounds = array<i64: 64, 1>}, {pipeline_mode = #tpu.pipeline_mode<synchronous>, transform_indices = @transform_3, window_bounds = array<i64: 64, 64>}, {pipeline_mode = #tpu.pipeline_mode<synchronous>, transform_indices = @transform_4, window_bounds = array<i64: 64, 1>}, {pipeline_mode = #tpu.pipeline_mode<synchronous>, transform_indices = @transform_5, window_bounds = array<i64: 2, 64>}, {pipeline_mode = #tpu.pipeline_mode<synchronous>, transform_indices = @transform_6, window_bounds = array<i64: 2, 1>}, {transform_indices = @transform_7, window_bounds = array<i64: 2, 2>}]} {
    %c0 = arith.constant 0 : index
    %c0_0 = arith.constant 0 : index
    %0 = vector.load %arg1[%c0, %c0_0] : memref<20x2xf32, #tpu.memory_space<vmem>>, vector<20x2xf32>
    %c0_1 = arith.constant 0 : index
    %c0_2 = arith.constant 0 : index
    %1 = vector.load %arg2[%c0_1, %c0_2] : memref<64x20xf32, #tpu.memory_space<vmem>>, vector<64x20xf32>
    %cst = arith.constant dense<0.000000e+00> : vector<64x2xf32>
    %2 = tpu.matmul %1, %0, %cst {dimension_numbers = #tpu.dot_dimension_numbers<[1], [0], [0], [1], [0, 0, 1, 1], [], []>} : vector<64x20xf32>, vector<20x2xf32>, vector<64x2xf32> -> vector<64x2xf32>
    %c0_3 = arith.constant 0 : index
    %c0_4 = arith.constant 0 : index
    %3 = vector.load %arg3[%c0_3, %c0_4] : memref<64x1xf32, #tpu.memory_space<vmem>>, vector<64x1xf32>
    %4 = vector.broadcast %3 : vector<64x1xf32> to vector<64x2xf32>
    %5 = arith.addf %2, %4 : vector<64x2xf32>
    %cst_5 = arith.constant 0.000000e+00 : f32
    %6 = vector.broadcast %cst_5 : f32 to vector<64x2xf32>
    %7 = arith.maximumf %5, %6 : vector<64x2xf32>
    %c0_6 = arith.constant 0 : index
    %c0_7 = arith.constant 0 : index
    %8 = vector.load %arg4[%c0_6, %c0_7] : memref<64x64xf32, #tpu.memory_space<vmem>>, vector<64x64xf32>
    %cst_8 = arith.constant dense<0.000000e+00> : vector<64x2xf32>
    %9 = tpu.matmul %8, %7, %cst_8 {dimension_numbers = #tpu.dot_dimension_numbers<[1], [0], [0], [1], [0, 0, 1, 1], [], []>} : vector<64x64xf32>, vector<64x2xf32>, vector<64x2xf32> -> vector<64x2xf32>
    %c0_9 = arith.constant 0 : index
    %c0_10 = arith.constant 0 : index
    %10 = vector.load %arg5[%c0_9, %c0_10] : memref<64x1xf32, #tpu.memory_space<vmem>>, vector<64x1xf32>
    %11 = vector.broadcast %10 : vector<64x1xf32> to vector<64x2xf32>
    %12 = arith.addf %9, %11 : vector<64x2xf32>
    %cst_11 = arith.constant 0.000000e+00 : f32
    %13 = vector.broadcast %cst_11 : f32 to vector<64x2xf32>
    %14 = arith.maximumf %12, %13 : vector<64x2xf32>
    %c0_12 = arith.constant 0 : index
    %c0_13 = arith.constant 0 : index
    %15 = vector.load %arg6[%c0_12, %c0_13] : memref<2x64xf32, #tpu.memory_space<vmem>>, vector<2x64xf32>
    %cst_14 = arith.constant dense<0.000000e+00> : vector<2x2xf32>
    %16 = tpu.matmul %15, %14, %cst_14 {dimension_numbers = #tpu.dot_dimension_numbers<[1], [0], [0], [1], [0, 0, 1, 1], [], []>} : vector<2x64xf32>, vector<64x2xf32>, vector<2x2xf32> -> vector<2x2xf32>
    %c0_15 = arith.constant 0 : index
    %c0_16 = arith.constant 0 : index
    %17 = vector.load %arg7[%c0_15, %c0_16] : memref<2x1xf32, #tpu.memory_space<vmem>>, vector<2x1xf32>
    %18 = vector.broadcast %17 : vector<2x1xf32> to vector<2x2xf32>
    %19 = arith.addf %16, %18 : vector<2x2xf32>
    %c0_17 = arith.constant 0 : index
    %c0_18 = arith.constant 0 : index
    %20 = vector.load %arg8[%c0_17, %c0_18] : memref<2x2xf32, #tpu.memory_space<vmem>>, vector<2x2xf32>
    tpu.vector_store %arg8[%c0_17, %c0_18], %19 {strides = array<i32>} : memref<2x2xf32, #tpu.memory_space<vmem>>, vector<2x2xf32>,
    return
  }
  func.func @transform_0(%arg0: i32) -> (i32, i32) {
    %c0_i32 = arith.constant 0 : i32
    %c0_i32_0 = arith.constant 0 : i32
    return %c0_i32, %arg0 : i32, i32
  }
  func.func @transform_1(%arg0: i32) -> (i32, i32) {
    %c0_i32 = arith.constant 0 : i32
    %c0_i32_0 = arith.constant 0 : i32
    %c0_i32_1 = arith.constant 0 : i32
    return %c0_i32, %c0_i32_0 : i32, i32
  }
  func.func @transform_2(%arg0: i32) -> (i32, i32) {
    %c0_i32 = arith.constant 0 : i32
    %c0_i32_0 = arith.constant 0 : i32
    %c0_i32_1 = arith.constant 0 : i32
    return %c0_i32, %c0_i32_0 : i32, i32
  }
  func.func @transform_3(%arg0: i32) -> (i32, i32) {
    %c0_i32 = arith.constant 0 : i32
    %c0_i32_0 = arith.constant 0 : i32
    %c0_i32_1 = arith.constant 0 : i32
    return %c0_i32, %c0_i32_0 : i32, i32
  }
  func.func @transform_4(%arg0: i32) -> (i32, i32) {
    %c0_i32 = arith.constant 0 : i32
    %c0_i32_0 = arith.constant 0 : i32
    %c0_i32_1 = arith.constant 0 : i32
    return %c0_i32, %c0_i32_0 : i32, i32
  }
  func.func @transform_5(%arg0: i32) -> (i32, i32) {
    %c0_i32 = arith.constant 0 : i32
    %c0_i32_0 = arith.constant 0 : i32
    %c0_i32_1 = arith.constant 0 : i32
    return %c0_i32, %c0_i32_0 : i32, i32
  }
  func.func @transform_6(%arg0: i32) -> (i32, i32) {
    %c0_i32 = arith.constant 0 : i32
    %c0_i32_0 = arith.constant 0 : i32
    %c0_i32_1 = arith.constant 0 : i32
    return %c0_i32, %c0_i32_0 : i32, i32
  }
  func.func @transform_7(%arg0: i32) -> (i32, i32) {
    %c0_i32 = arith.constant 0 : i32
    %c0_i32_0 = arith.constant 0 : i32
    return %c0_i32, %arg0 : i32, i32
  }
}

</mosaic_0001>

<bundles_post_ra>
// kernel: tpu_custom_call.1
= control target key start
LH: loop header
LB: loop body
LE: loop exit
PB: predicated region body
PF: predicated region fallthrough
CT: control target
= control target key end

     0   :  { %vm86_vm0 = vcmask 162816   ;;  %vm111_vm1 = vcmask 1043456   ;;  %v700_v5 = vmov 0   ;;  %s887_s0 = inlined_call_operand.vmem [shape: f32[20,2], index: 0, kind: input, shape index: {}]   ;;  %s888_s1 = inlined_call_operand.vmem [shape: f32[64,20], index: 1, kind: input, shape index: {}]   ;;  %s889_s2 = inlined_call_operand.vmem [shape: f32[64,1], index: 2, kind: input, shape index: {}]   ;;  %s890_s3 = inlined_call_operand.vmem [shape: f32[64,64], index: 3, kind: input, shape index: {}]   ;;  %s891_s4 = inlined_call_operand.vmem [shape: f32[64,1], index: 4, kind: input, shape index: {}]   ;;  %s892_s5 = inlined_call_operand.vmem [shape: f32[2,64], index: 5, kind: input, shape index: {}]   ;;  %s893_s6 = inlined_call_operand.vmem [shape: f32[2,1], index: 6, kind: input, shape index: {}]   ;;  %s894_s7 = inlined_call_operand.hbm [shape: f32[2,2], index: 7, kind: output, shape index: {}]  }
   0x1   :  { %v27_v0 = vld [vmem:[%s887_s0] sm:$0xff]  ;;  %v28_v1 = vld [vmem:[%s887_s0 + $0x8] sm:$0xff]  ;;  %v29_v4 = vld [vmem:[%s887_s0 + $0x10] sm:$0xf]  ;;  %674 = vset.pattern.permute.xlu0 %v700_v5  ;;  %675 = vset.pattern.permute.xlu1 %v700_v5 }
   0x2   :  { %v637_v2 = vpack.c.bf16 %v28_v1, %v27_v0  ;;  %v30_v3 = vld [vmem:[%s888_s1] sm:$0xff]  ;;  %v40_v7 = vld [vmem:[%s889_s2 + $0x10] sm:$0xff]  ;;  %v39_v8 = vld [vmem:[%s889_s2 + $0x8] sm:$0xff] }
   0x3   :  { %578 = vmatprep.mubr.msk.f32.mxu0 %vm86_vm0, %v30_v3  ;;  %v38_v6 = vld [vmem:[%s889_s2] sm:$0xff]  ;;  %58 = vperm.xlu1 %675, %v40_v7   ;;  %v31_v9 = vld [vmem:[%s888_s1 + $0x8] sm:$0xff]  ;;  %v41_v10 = vld [vmem:[%s889_s2 + $0x18] sm:$0xff] }
   0x4   :  { %638 = vmatprep.subr.bf16.mxu0 %v637_v2  ;;  %48 = vperm.xlu0 %674, %v38_v6   ;;  %v32_v11 = vld [vmem:[%s888_s1 + $0x10] sm:$0xff]  ;;  %v42_v12 = vld [vmem:[%s889_s2 + $0x20] sm:$0xff] }
   0x5   :  { %640 = vmatpush3.bf16.msra.mxu0 %v637_v2 }
   0x6   :  { %576 = vmatprep.subr.msk.mxu0 %vm111_vm1, %v29_v4 }
   0x7   :  { %63 = vperm.xlu1 %675, %v41_v10  }
   0x8   :  { %53 = vperm.xlu0 %674, %v39_v8  }
   0x9   :  { %577 = vmatpush3.msk.msra.mxu0 %vm111_vm1, %v29_v4 }
   0xa   :  { %579 = vmatmul.mubr.msk.f32.vlgmr.msra.gmra.mrb[0].mxu0 %vm86_vm0, %v31_v9 }
   0xb   :  { %12 = vsyncpa [#allocation3], 0  ;;  %581 = vmatprep.mubr.msk.f32.mxu0 %vm86_vm0, %v32_v11  ;;  %v33_v13 = vld [vmem:[%s888_s1 + $0x18] sm:$0xff]  ;;  %v43_v14 = vld [vmem:[%s889_s2 + $0x28] sm:$0xff]  ;;  %vm284_vm2 = vcmask 523264   ;;  %v701_v10 = vmov 0.0|0.0  }
   0xc   :  { %v34_v15 = vld [vmem:[%s888_s1 + $0x20] sm:$0xff]  ;;  %68 = vperm.xlu0 %674, %v42_v12   ;;  %v44_v16 = vld [vmem:[%s889_s2 + $0x30] sm:$0xff]  ;;  %73 = vperm.xlu1 %675, %v43_v14   ;;  %v35_v17 = vld [vmem:[%s888_s1 + $0x28] sm:$0xff]  ;;  %vm702_vm3 = vmmov 0   ;;  %v703_v11 = vmov 0.0   ;;  %s704_s20 = smov [#allocation2]  }
   0xd   :  { %v45_v18 = vld [vmem:[%s889_s2 + $0x38] sm:$0xff]  ;;  %v36_v19 = vld [vmem:[%s888_s1 + $0x30] sm:$0xff]  ;;  %v236_v20 = vld [vmem:[%s891_s4] sm:$0xff]  ;;  %657 = vmatprep.subr.bf16.mxu0 %v701_v10  ;;  %s510_s21 = sshll.u32 %s704_s20, 4  ;;  %vm502_vm4 = vcmask 9216   ;;  %s511_s21 = int_to_ptr.vmem [resolvable:$true] %s510_s21 }
   0xe   :  { %582 = vmatmul.mubr.msk.f32.gmra.mrb[2].mxu0 %vm86_vm0, %v33_v13  ;;  %v37_v21 = vld [vmem:[%s888_s1 + $0x38] sm:$0xff]  ;;  %v237_v22 = vld [vmem:[%s891_s4 + $0x8] sm:$0xff]  ;;  %v238_v23 = vld [vmem:[%s891_s4 + $0x10] sm:$0xff]  ;;  %s676_s22 = scalar_lea.vmem %s511_s21, 32  ;;  %p681_p1 = scmp.lt.s32.totalorder %s511_s21, %s511_s21 }
   0xf   :  { %584 = vmatprep.mubr.msk.f32.mxu0 %vm86_vm0, %v34_v15  ;;  %v239_v24 = vld [vmem:[%s891_s4 + $0x18] sm:$0xff]  ;;  %v240_v25 = vld [vmem:[%s891_s4 + $0x20] sm:$0xff]  ;;  %v241_v26 = vld [vmem:[%s891_s4 + $0x28] sm:$0xff]  ;;  %p677_p0 = scmp.ne.s32.totalorder %s511_s21, %s676_s22  ;;  %p682_p2 = scmp.lt.s32.totalorder %s676_s22, %s676_s22 }
  0x10   :  { %78 = vperm.xlu0 %674, %v44_v16   ;;  %83 = vperm.xlu1 %675, %v45_v18   ;;  %v242_v27 = vld [vmem:[%s891_s4 + $0x30] sm:$0xff]  ;;  %v243_v28 = vld [vmem:[%s891_s4 + $0x38] sm:$0xff]  ;;  %v423_v29 = vld [vmem:[%s893_s6] sm:$0x3] }
  0x11   :  { %v228_v30 = vld [vmem:[%s890_s3] sm:$0xff]  ;;  %v229_v3 = vld [vmem:[%s890_s3 + $0x8] sm:$0xff]  ;;  %v230_v4 = vld [vmem:[%s890_s3 + $0x10] sm:$0xff]  ;;  %p683_p3 = por %p682_p2, %p681_p1 }
  0x12   :  { %585 = vmatmul.mubr.msk.f32.gmra.mrb[4].mxu0 %vm86_vm0, %v35_v17  ;;  %606 = vmatprep.mubr.msk.f32.mxu1 %vm284_vm2, %v228_v30  ;;  %v231_v5 = vld [vmem:[%s890_s3 + $0x18] sm:$0xff]  ;;  %v232_v6 = vld [vmem:[%s890_s3 + $0x20] sm:$0xff]  ;;  %v233_v7 = vld [vmem:[%s890_s3 + $0x28] sm:$0xff] }
  0x13   :  { %587 = vmatprep.mubr.msk.f32.mxu0 %vm86_vm0, %v36_v19  ;;  %v234_v8 = vld [vmem:[%s890_s3 + $0x30] sm:$0xff]  ;;  %v235_v9 = vld [vmem:[%s890_s3 + $0x38] sm:$0xff]  ;;  %p684_p4 = pnand %p683_p3, %p677_p0 }
  0x14   :  { %246 = vperm.xlu0 %674, %v236_v20   ;;  %251 = vperm.xlu1 %675, %v237_v22  }
  0x16   :  { %588 = vmatmul.mubr.msk.f32.gmra.mrb[6].mxu0 %vm86_vm0, %v37_v21 }
  0x17   :  { %634 = vmatprep.mubr.msk.f32.mxu0 %vm702_vm3, %v703_v11 }
  0x18   :  { %256 = vperm.xlu0 %674, %v238_v23   ;;  %261 = vperm.xlu1 %675, %v239_v24  }
  0x1c   :  { %266 = vperm.xlu0 %674, %v240_v25   ;;  %271 = vperm.xlu1 %675, %v241_v26  }
  0x20   :  { %276 = vperm.xlu0 %674, %v242_v27   ;;  %281 = vperm.xlu1 %675, %v243_v28  }
  0x24   :  { %426 = vperm.xlu0 %674, %v423_v29  }
  0x82   :  { %v59_v32 = vpop.permute.xlu1 %58 }
  0x83   :  { %v49_v31 = vpop.permute.xlu0 %48 }
  0x86   :  { %v64_v34 = vpop.permute.xlu1 %63 }
  0x87   :  { %v54_v33 = vpop.permute.xlu0 %53 }
  0x8b   :  { %v74_v44 = vpop.permute.xlu1 %73  ;;  %v69_v47 = vpop.permute.xlu0 %68 }
  0x8f   :  { %v84_v56 = vpop.permute.xlu1 %83  ;;  %v79_v59 = vpop.permute.xlu0 %78 }
  0x93   :  { %v252_v12 = vpop.permute.xlu1 %251  ;;  %v247_v13 = vpop.permute.xlu0 %246 }
  0x97   :  { %v262_v14 = vpop.permute.xlu1 %261  ;;  %v257_v16 = vpop.permute.xlu0 %256 }
  0x9b   :  { %v272_v25 = vpop.permute.xlu1 %271  ;;  %v267_v28 = vpop.permute.xlu0 %266 }
  0xdd   :  { %v580_v35 = vpop.f32.mrb[0].mxu0 }
  0xde   :  { %v187_v36 = vadd.f32 %v580_v35, %v54_v33  ;;  %v181_v37 = vpop.f32.mrb[1].mxu0 }
  0xdf   :  { %v182_v38 = vadd.f32 %v181_v37, %v49_v31  ;;  %v282_v37 = vpop.permute.xlu1 %281 }
  0xe0   :  { %v221_v39 = vmax.f32 %v187_v36, 0.0 }
  0xe1   :  { %v220_v40 = vmax.f32 %v182_v38, 0.0  ;;  %v583_v41 = vpop.f32.mrb[2].mxu0 }
  0xe2   :  { %v197_v42 = vadd.f32 %v583_v41, %v64_v34  ;;  %v191_v43 = vpop.f32.mrb[3].mxu0 }
  0xe3   :  { %v192_v45 = vadd.f32 %v191_v43, %v59_v32  ;;  %v641_v46 = vpack.c.bf16 %v221_v39, %v220_v40  ;;  %v277_v40 = vpop.permute.xlu0 %276 }
  0xe4   :  { %v223_v48 = vmax.f32 %v197_v42, 0.0 }
  0xe5   :  { %v222_v49 = vmax.f32 %v192_v45, 0.0  ;;  %v586_v50 = vpop.f32.mrb[4].mxu0  ;;  %642 = vmatprep.subr.bf16.mxu1 %v641_v46 }
  0xe6   :  { %v207_v51 = vadd.f32 %v586_v50, %v74_v44  ;;  %v201_v52 = vpop.f32.mrb[5].mxu0  ;;  %644 = vmatpush3.bf16.msra.mxu1 %v641_v46 }
  0xe7   :  { %v645_v53 = vpack.c.bf16 %v223_v48, %v222_v49  ;;  %v202_v54 = vadd.f32 %v201_v52, %v69_v47  ;;  %v422_v48 = vld [vmem:[%s892_s5] sm:$0x3]  ;;  %v427_v49 = vpop.permute.xlu0 %426 }
  0xe8   :  { %v225_v55 = vmax.f32 %v207_v51, 0.0 }
  0xe9   :  { %v224_v57 = vmax.f32 %v202_v54, 0.0  ;;  %v589_v58 = vpop.f32.mrb[6].mxu0  ;;  %646 = vmatprep.subr.bf16.mxu1 %v645_v53 }
  0xea   :  { %v217_v60 = vadd.f32 %v589_v58, %v84_v56  ;;  %v211_v61 = vpop.f32.mrb[7].mxu0  ;;  %648 = vmatpush3.bf16.msra.mxu1 %v645_v53 }
  0xeb   :  { %v649_v62 = vpack.c.bf16 %v225_v55, %v224_v57  ;;  %v212_v63 = vadd.f32 %v211_v61, %v79_v59 }
  0xec   :  { %v227_v0 = vmax.f32 %v217_v60, 0.0 }
  0xed   :  { %v226_v1 = vmax.f32 %v212_v63, 0.0  ;;  %650 = vmatprep.subr.bf16.mxu1 %v649_v62 }
  0xee   :  { %652 = vmatpush3.bf16.msra.mxu1 %v649_v62 }
  0xef   :  { %v653_v2 = vpack.c.bf16 %v227_v0, %v226_v1 }
  0xf1   :  { %654 = vmatprep.subr.bf16.mxu1 %v653_v2 }
  0xf2   :  { %656 = vmatpush3.bf16.msra.mxu1 %v653_v2 }
  0xf5   :  { %607 = vmatmul.mubr.msk.f32.vlgmr.msra.gmra.mrb[0].mxu1 %vm284_vm2, %v229_v3 }
  0xf6   :  { %609 = vmatprep.mubr.msk.f32.mxu1 %vm284_vm2, %v230_v4 }
  0xf9   :  { %610 = vmatmul.mubr.msk.f32.gmra.mrb[2].mxu1 %vm284_vm2, %v231_v5 }
  0xfa   :  { %612 = vmatprep.mubr.msk.f32.mxu1 %vm284_vm2, %v232_v6 }
  0xfd   :  { %613 = vmatmul.mubr.msk.f32.gmra.mrb[4].mxu1 %vm284_vm2, %v233_v7 }
  0xfe   :  { %615 = vmatprep.mubr.msk.f32.mxu1 %vm284_vm2, %v234_v8 }
 0x101   :  { %616 = vmatmul.mubr.msk.f32.gmra.mrb[6].mxu1 %vm284_vm2, %v235_v9 }
 0x1c8   :  { %v608_v15 = vpop.f32.mrb[0].mxu1 }
 0x1c9   :  { %v381_v17 = vadd.f32 %v608_v15, %v252_v12  ;;  %v375_v18 = vpop.f32.mrb[1].mxu1 }
 0x1ca   :  { %v376_v19 = vadd.f32 %v375_v18, %v247_v13 }
 0x1cb   :  { %v415_v20 = vmax.f32 %v381_v17, 0.0 }
 0x1cc   :  { %v414_v21 = vmax.f32 %v376_v19, 0.0  ;;  %v611_v22 = vpop.f32.mrb[2].mxu1 }
 0x1cd   :  { %v391_v23 = vadd.f32 %v611_v22, %v262_v14  ;;  %v385_v24 = vpop.f32.mrb[3].mxu1 }
 0x1ce   :  { %v658_v26 = vpack.c.bf16 %v415_v20, %v414_v21  ;;  %v386_v27 = vadd.f32 %v385_v24, %v257_v16 }
 0x1cf   :  { %v417_v29 = vmax.f32 %v391_v23, 0.0 }
 0x1d0   :  { %v416_v30 = vmax.f32 %v386_v27, 0.0  ;;  %v614_v31 = vpop.f32.mrb[4].mxu1  ;;  %659 = vmatpush3.bf16.msra.mxu0 %v658_v26 }
 0x1d1   :  { %v401_v32 = vadd.f32 %v614_v31, %v272_v25  ;;  %v395_v33 = vpop.f32.mrb[5].mxu1  ;;  %660 = vmatprep.subr.bf16.mxu0 %v701_v10 }
 0x1d2   :  { %v661_v34 = vpack.c.bf16 %v417_v29, %v416_v30  ;;  %v396_v35 = vadd.f32 %v395_v33, %v267_v28 }
 0x1d3   :  { %v419_v36 = vmax.f32 %v401_v32, 0.0 }
 0x1d4   :  { %v418_v38 = vmax.f32 %v396_v35, 0.0  ;;  %v617_v39 = vpop.f32.mrb[6].mxu1  ;;  %662 = vmatpush3.bf16.msra.mxu0 %v661_v34 }
 0x1d5   :  { %v411_v41 = vadd.f32 %v617_v39, %v282_v37  ;;  %v405_v42 = vpop.f32.mrb[7].mxu1  ;;  %663 = vmatprep.subr.bf16.mxu0 %v701_v10 }
 0x1d6   :  { %v664_v43 = vpack.c.bf16 %v419_v36, %v418_v38  ;;  %v406_v44 = vadd.f32 %v405_v42, %v277_v40 }
 0x1d7   :  { %v421_v45 = vmax.f32 %v411_v41, 0.0 }
 0x1d8   :  { %v420_v46 = vmax.f32 %v406_v44, 0.0  ;;  %665 = vmatpush3.bf16.msra.mxu0 %v664_v43 }
 0x1d9   :  { %666 = vmatprep.subr.bf16.mxu0 %v701_v10 }
 0x1da   :  { %v667_v47 = vpack.c.bf16 %v421_v45, %v420_v46 }
 0x1dc   :  { %668 = vmatpush3.bf16.msra.mxu0 %v667_v47 }
 0x1df   :  { %635 = vmatmul.mubr.msk.f32.vlgmr.msra.gmra.mrb[8].mxu0 %vm284_vm2, %v422_v48 }
 0x2b2   :  { %v498_v50 = vpop.f32.mrb[8].mxu0 }
 0x2b3   :  { %v499_v51 = vadd.f32 %v498_v50, %v427_v49  ;;  %v636_v52 = vpop.f32.mrb[9].mxu0 }
 0x2b5   :  { %503 = vst.msk [vmem:[#allocation2] sm:$0x3] %vm502_vm4, %v499_v51 }
 0x2b6   :  { %687 = shalt.err (!%p684_p4)
}
 0x2b7   :  { %s688_s23 = scalar_lea.hbm %s894_s7, 32 }
 0x2b8   :  { %p689_p5 = scmp.ne.s32.totalorder %s894_s7, %s688_s23  ;;  %p692_p6 = scmp.lt.u32.totalorder %s688_s23, %s894_s7 }
 0x2ba   :  { %p694_p7 = pnand %p692_p6, %p689_p5 }
 0x2bc   :  { %697 = shalt.err (!%p694_p7)
}
 0x2bd   :  { %513 = dma.vmem_to_hbm [thread:$0]  %s511_s21, 32, %s894_s7, [#allocation3]  }
 0x2be   :  { %698 = dma.done.wait [#allocation3], 32  }
 0x2bf   :  { %699 = vsyncadd [#allocation3], 4294967264 }
 0x2c0   :  { %517 = vsyncpa [#allocation3], 1 }

</bundles_post_ra>
